<compile_context>
chip_gen: v6e
topology: v6e:2x2x1
jax: 0.10.0
libtpu: 0.0.40
codegen_flags: <defaults>
</compile_context>

<pallas_src>
import functools

import jax
import jax.numpy as jnp
from jax.experimental import pallas as pl
from jax.experimental.pallas import tpu as pltpu


def _round_up(x, m):
    return (x + m - 1) // m * m


def _mlp_kernel(x_ref, wgu_ref, wd_ref, o_ref, acc_ref, *, tile_i):
    """Eval-mode kernel (dropout is identity)."""
    j = pl.program_id(1)

    @pl.when(j == 0)
    def _():
        acc_ref[...] = jnp.zeros_like(acc_ref)

    # One fused MXU pass for gate+up: (tm, H) @ (H, 2*ti) -> (tm, 2*ti) f32.
    gu = jnp.dot(x_ref[...], wgu_ref[...], preferred_element_type=jnp.float32)
    gate = gu[:, :tile_i]
    up = gu[:, tile_i:]
    hidden = (gate * jax.nn.sigmoid(gate)) * up            # SiLU(gate) * up

    acc_ref[...] += jnp.dot(hidden.astype(wd_ref.dtype), wd_ref[...],
                            preferred_element_type=jnp.float32)

    @pl.when(j == pl.num_programs(1) - 1)
    def _():
        o_ref[...] = acc_ref[...].astype(o_ref.dtype)


def _mlp_kernel_dropout(x_ref, wgu_ref, wd_ref, u_ref, o_ref, acc_ref, *,
                        tile_i, dropout_p):
    """Training-mode kernel: same reduction + inverted dropout in the finalize."""
    j = pl.program_id(1)

    @pl.when(j == 0)
    def _():
        acc_ref[...] = jnp.zeros_like(acc_ref)

    gu = jnp.dot(x_ref[...], wgu_ref[...], preferred_element_type=jnp.float32)
    gate = gu[:, :tile_i]
    up = gu[:, tile_i:]
    hidden = (gate * jax.nn.sigmoid(gate)) * up

    acc_ref[...] += jnp.dot(hidden.astype(wd_ref.dtype), wd_ref[...],
                            preferred_element_type=jnp.float32)

    @pl.when(j == pl.num_programs(1) - 1)
    def _():
        keep = u_ref[...] >= dropout_p
        scale = 1.0 / (1.0 - dropout_p)
        o_ref[...] = jnp.where(keep, acc_ref[...] * scale, 0.0).astype(o_ref.dtype)


def mlp_forward(x, w_gate, w_up, w_down, *, dropout_p=0.3, training=False,
                seed=0, tile_m=256, tile_i=512,
                vmem_limit_bytes=64 * 1024 * 1024):
    """x: (B, S, H). Weights in (in, out) layout: w_gate/w_up: (H, I), w_down: (I, H)."""
    B, S, H = x.shape
    I = w_gate.shape[1]
    M = B * S

    # Pad to MXU / lane friendly sizes (zero padding is exact for SwiGLU).
    Hp = _round_up(H, 128)                         # lane-dense stores + contraction
    tile_i = min(tile_i, _round_up(I, 128))
    Ip = _round_up(I, tile_i)
    tile_m = min(tile_m, _round_up(M, 8))
    Mp = _round_up(M, tile_m)
    n_i = Ip // tile_i

    x2d = jnp.pad(x.reshape(M, H), ((0, Mp - M), (0, Hp - H))).astype(jnp.bfloat16)
    wg = jnp.pad(w_gate, ((0, Hp - H), (0, Ip - I)))
    wu = jnp.pad(w_up, ((0, Hp - H), (0, Ip - I)))
    # Fused gate/up weight, laid out per I-tile as [gate_j | up_j] so one dot per
    # grid step covers both projections for that intermediate tile.
    w_gu = jnp.stack([wg.reshape(Hp, n_i, tile_i),
                      wu.reshape(Hp, n_i, tile_i)], axis=2)
    w_gu = w_gu.reshape(Hp, 2 * Ip).astype(jnp.bfloat16)
    w_d = jnp.pad(w_down, ((0, Ip - I), (0, Hp - H))).astype(jnp.bfloat16)

    grid = (Mp // tile_m, n_i)
    x_spec = pl.BlockSpec((tile_m, Hp), lambda i, j: (i, 0))
    wgu_spec = pl.BlockSpec((Hp, 2 * tile_i), lambda i, j: (0, j))
    wd_spec = pl.BlockSpec((tile_i, Hp), lambda i, j: (j, 0))
    out_spec = pl.BlockSpec((tile_m, Hp), lambda i, j: (i, 0))

    use_dropout = training and dropout_p > 0.0
    if use_dropout:
        u = jax.random.uniform(jax.random.PRNGKey(seed), (Mp, Hp), jnp.float32)
        kernel = functools.partial(_mlp_kernel_dropout, tile_i=tile_i,
                                   dropout_p=float(dropout_p))
        in_specs = [x_spec, wgu_spec, wd_spec,
                    pl.BlockSpec((tile_m, Hp), lambda i, j: (i, 0))]
        args = (x2d, w_gu, w_d, u)
    else:
        kernel = functools.partial(_mlp_kernel, tile_i=tile_i)
        in_specs = [x_spec, wgu_spec, wd_spec]
        args = (x2d, w_gu, w_d)

    out2d = pl.pallas_call(
        kernel,
        out_shape=jax.ShapeDtypeStruct((Mp, Hp), x.dtype),
        grid_spec=pltpu.PrefetchScalarGridSpec(
            num_scalar_prefetch=0,
            grid=grid,
            in_specs=in_specs,
            out_specs=out_spec,
            scratch_shapes=[pltpu.VMEM((tile_m, Hp), jnp.float32)],
        ),
        compiler_params=pltpu.CompilerParams(
            dimension_semantics=("parallel", "arbitrary"),
            vmem_limit_bytes=vmem_limit_bytes,
        ),
    )(*args)

    return out2d[:M, :H].reshape(B, S, H)


def init_params(key, hidden_size, intermediate_size):
    """Deterministic init mimicking nn.Linear's U(-1/sqrt(fan_in), 1/sqrt(fan_in)).

    Returns weights already transposed to (in, out)."""
    kg, ku, kd = jax.random.split(key, 3)
    bound_h = 1.0 / (hidden_size ** 0.5)
    bound_i = 1.0 / (intermediate_size ** 0.5)
    w_gate = jax.random.uniform(kg, (hidden_size, intermediate_size),
                                jnp.float32, -bound_h, bound_h)
    w_up = jax.random.uniform(ku, (hidden_size, intermediate_size),
                              jnp.float32, -bound_h, bound_h)
    w_down = jax.random.uniform(kd, (intermediate_size, hidden_size),
                                jnp.float32, -bound_i, bound_i)
    return w_gate, w_up, w_down


if __name__ == "__main__":
    hidden_size = 32
    intermediate_size = 64
    batch, seq = 2, 8

    key = jax.random.PRNGKey(0)
    kx, kp = jax.random.split(key)
    x = jax.random.normal(kx, (batch, seq, hidden_size), dtype=jnp.float32)
    w_gate, w_up, w_down = init_params(kp, hidden_size, intermediate_size)

    # Eval-mode forward (dropout is identity, matching model.eval()).
    out = jax.block_until_ready(
        mlp_forward(x, w_gate, w_up, w_down, dropout_p=0.3, training=False))

    # Reference in plain JAX replicating the kernel's bf16-compute / f32-accumulate.
    xb = x.astype(jnp.bfloat16)
    gate = jnp.dot(xb, w_gate.astype(jnp.bfloat16),
                   preferred_element_type=jnp.float32)
    up = jnp.dot(xb, w_up.astype(jnp.bfloat16),
                 preferred_element_type=jnp.float32)
    hidden = (gate * jax.nn.sigmoid(gate)) * up
    ref = jnp.dot(hidden.astype(jnp.bfloat16), w_down.astype(jnp.bfloat16),
                  preferred_element_type=jnp.float32)
    assert out.shape == ref.shape
    assert jnp.allclose(out, ref, atol=1e-2, rtol=1e-2), "mismatch vs reference"

    # Training path: host-generated dropout mask fused into the kernel finalize.
    out_tr = jax.block_until_ready(
        mlp_forward(x, w_gate, w_up, w_down, dropout_p=0.3, training=True,
                    seed=123))
    assert out_tr.shape == out.shape
    drop_frac = float(jnp.mean(out_tr == 0.0))
    assert 0.05 < drop_frac < 0.6, f"unexpected dropout fraction {drop_frac}"

    print("KERNEL_OK")
</pallas_src>

<mosaic_0001>
module attributes {stable_mosaic.version = 11 : i64} {
  func.func @_mlp_kernel(%arg0: i32, %arg1: i32, %arg2: memref<16x128xbf16, #tpu.memory_space<vmem>>, %arg3: memref<128x256xbf16, #tpu.memory_space<vmem>>, %arg4: memref<128x128xbf16, #tpu.memory_space<vmem>>, %arg5: memref<16x128xf32, #tpu.memory_space<vmem>>, %arg6: memref<16x128xf32, #tpu.memory_space<vmem>>) attributes {dimension_semantics = [#tpu.dimension_semantics<parallel>, #tpu.dimension_semantics<arbitrary>], iteration_bounds = array<i64: 1, 1>, scalar_prefetch = 0 : i64, scratch_operands = 1 : i64, tpu.core_type = #tpu.core_type<tc>, window_params = [{transform_indices = @transform_0, window_bounds = array<i64: 16, 128>}, {transform_indices = @transform_1, window_bounds = array<i64: 128, 256>}, {transform_indices = @transform_2, window_bounds = array<i64: 128, 128>}, {transform_indices = @transform_3, window_bounds = array<i64: 16, 128>}]} {
    %c0_i32 = arith.constant 0 : i32
    %0 = arith.cmpi eq, %arg1, %c0_i32 : i32
    %1 = arith.extui %0 : i1 to i32
    %c0_i32_0 = arith.constant 0 : i32
    %2 = arith.cmpi ne, %1, %c0_i32_0 : i32
    scf.if %2 {
      %cst_14 = arith.constant 0.000000e+00 : f32
      %24 = vector.broadcast %cst_14 : f32 to vector<16x128xf32>
      %c0_15 = arith.constant 0 : index
      %c0_16 = arith.constant 0 : index
      %25 = vector.load %arg6[%c0_15, %c0_16] : memref<16x128xf32, #tpu.memory_space<vmem>>, vector<16x128xf32>
      tpu.vector_store %arg6[%c0_15, %c0_16], %24 {strides = array<i32>} : memref<16x128xf32, #tpu.memory_space<vmem>>, vector<16x128xf32>,
    } else {
    }
    %c0 = arith.constant 0 : index
    %c0_1 = arith.constant 0 : index
    %3 = vector.load %arg2[%c0, %c0_1] : memref<16x128xbf16, #tpu.memory_space<vmem>>, vector<16x128xbf16>
    %c0_2 = arith.constant 0 : index
    %c0_3 = arith.constant 0 : index
    %4 = vector.load %arg3[%c0_2, %c0_3] : memref<128x256xbf16, #tpu.memory_space<vmem>>, vector<128x256xbf16>
    %cst = arith.constant dense<0.000000e+00> : vector<16x256xf32>
    %5 = tpu.matmul %3, %4, %cst {dimension_numbers = #tpu.dot_dimension_numbers<[1], [0], [0], [1], [0, 0, 1, 1], [], []>} : vector<16x128xbf16>, vector<128x256xbf16>, vector<16x256xf32> -> vector<16x256xf32>
    %6 = vector.extract_strided_slice %5 {offsets = [0, 0], sizes = [16, 128], strides = [1, 1]} : vector<16x256xf32> to vector<16x128xf32>
    %7 = vector.extract_strided_slice %5 {offsets = [0, 128], sizes = [16, 128], strides = [1, 1]} : vector<16x256xf32> to vector<16x128xf32>
    %8 = arith.negf %6 : vector<16x128xf32>
    %9 = math.exp %8 : vector<16x128xf32>
    %cst_4 = arith.constant 1.000000e+00 : f32
    %10 = vector.broadcast %cst_4 : f32 to vector<16x128xf32>
    %11 = arith.addf %10, %9 : vector<16x128xf32>
    %12 = arith.divf %10, %11 : vector<16x128xf32>
    %13 = arith.mulf %6, %12 : vector<16x128xf32>
    %14 = arith.mulf %13, %7 : vector<16x128xf32>
    %c0_5 = arith.constant 0 : index
    %c0_6 = arith.constant 0 : index
    %15 = vector.load %arg6[%c0_5, %c0_6] : memref<16x128xf32, #tpu.memory_space<vmem>>, vector<16x128xf32>
    %16 = arith.truncf %14 : vector<16x128xf32> to vector<16x128xbf16>
    %c0_7 = arith.constant 0 : index
    %c0_8 = arith.constant 0 : index
    %17 = vector.load %arg4[%c0_7, %c0_8] : memref<128x128xbf16, #tpu.memory_space<vmem>>, vector<128x128xbf16>
    %cst_9 = arith.constant dense<0.000000e+00> : vector<16x128xf32>
    %18 = tpu.matmul %16, %17, %cst_9 {dimension_numbers = #tpu.dot_dimension_numbers<[1], [0], [0], [1], [0, 0, 1, 1], [], []>} : vector<16x128xbf16>, vector<128x128xbf16>, vector<16x128xf32> -> vector<16x128xf32>
    %19 = arith.addf %15, %18 : vector<16x128xf32>
    %c0_10 = arith.constant 0 : index
    %c0_11 = arith.constant 0 : index
    %20 = vector.load %arg6[%c0_10, %c0_11] : memref<16x128xf32, #tpu.memory_space<vmem>>, vector<16x128xf32>
    tpu.vector_store %arg6[%c0_10, %c0_11], %19 {strides = array<i32>} : memref<16x128xf32, #tpu.memory_space<vmem>>, vector<16x128xf32>,
    %c0_i32_12 = arith.constant 0 : i32
    %21 = arith.cmpi eq, %arg1, %c0_i32_12 : i32
    %22 = arith.extui %21 : i1 to i32
    %c0_i32_13 = arith.constant 0 : i32
    %23 = arith.cmpi ne, %22, %c0_i32_13 : i32
    scf.if %23 {
      %c0_14 = arith.constant 0 : index
      %c0_15 = arith.constant 0 : index
      %24 = vector.load %arg6[%c0_14, %c0_15] : memref<16x128xf32, #tpu.memory_space<vmem>>, vector<16x128xf32>
      %c0_16 = arith.constant 0 : index
      %c0_17 = arith.constant 0 : index
      %25 = vector.load %arg5[%c0_16, %c0_17] : memref<16x128xf32, #tpu.memory_space<vmem>>, vector<16x128xf32>
      tpu.vector_store %arg5[%c0_16, %c0_17], %24 {strides = array<i32>} : memref<16x128xf32, #tpu.memory_space<vmem>>, vector<16x128xf32>,
    } else {
    }
    return
  }
  func.func @transform_0(%arg0: i32, %arg1: i32) -> (i32, i32) {
    %c0_i32 = arith.constant 0 : i32
    %c0_i32_0 = arith.constant 0 : i32
    return %arg0, %c0_i32 : i32, i32
  }
  func.func @transform_1(%arg0: i32, %arg1: i32) -> (i32, i32) {
    %c0_i32 = arith.constant 0 : i32
    %c0_i32_0 = arith.constant 0 : i32
    return %c0_i32, %arg1 : i32, i32
  }
  func.func @transform_2(%arg0: i32, %arg1: i32) -> (i32, i32) {
    %c0_i32 = arith.constant 0 : i32
    %c0_i32_0 = arith.constant 0 : i32
    return %arg1, %c0_i32 : i32, i32
  }
  func.func @transform_3(%arg0: i32, %arg1: i32) -> (i32, i32) {
    %c0_i32 = arith.constant 0 : i32
    %c0_i32_0 = arith.constant 0 : i32
    return %arg0, %c0_i32 : i32, i32
  }
}

</mosaic_0001>

<bundles_post_ra>
// kernel: tpu_custom_call.1
= control target key start
LH: loop header
LB: loop body
LE: loop exit
PB: predicated region body
PF: predicated region fallthrough
CT: control target
= control target key end

     0   :  { %8 = vsyncpa [#allocation4], 0  ;;  %s606_s0 = inlined_call_operand.hbm [shape: bf16[16,128], index: 0, kind: input, shape index: {}]   ;;  %s607_s1 = inlined_call_operand.hbm [shape: bf16[128,256], index: 1, kind: input, shape index: {}]   ;;  %s608_s2 = inlined_call_operand.hbm [shape: bf16[128,128], index: 2, kind: input, shape index: {}]   ;;  %s609_s3 = inlined_call_operand.hbm [shape: f32[16,128], index: 3, kind: output, shape index: {}]  }
   0x1   :  { %9 = vsyncpa [#allocation7], 0 }
   0x2   :  { %10 = vsyncpa [#allocation5], 0  ;;  %s557_s12 = smov [#allocation6]  }
   0x3   :  { %s28_s13 = sshll.u32 %s557_s12, 4  ;;  %s29_s13 = int_to_ptr.vmem [resolvable:$true] %s28_s13 }
   0x4   :  { %s479_s14 = scalar_lea.vmem %s29_s13, 2048  ;;  %p484_p1 = scmp.lt.s32.totalorder %s29_s13, %s29_s13 }
   0x5   :  { %p480_p0 = scmp.ne.s32.totalorder %s29_s13, %s479_s14  ;;  %p485_p2 = scmp.lt.s32.totalorder %s479_s14, %s479_s14 }
   0x7   :  { %p486_p3 = por %p485_p2, %p484_p1 }
   0x9   :  { %p487_p4 = pnand %p486_p3, %p480_p0 }
   0xb   :  { %490 = shalt.err (!%p487_p4)
}
   0xc   :  { %s558_s15 = smov 128   ;;  %s559_s16 = smov 8  }
   0xd   :  { %34 = dma.hbm_to_vmem [thread:$0]  %s607_s1, 2048, %s29_s13, [#allocation7], %s558_s15, %s558_s15, %s559_s16  }
   0xe   :  { %s560_s19 = smov [#allocation3]  }
   0xf   :  { %s16_s20 = sshll.u32 %s560_s19, 4  ;;  %s17_s20 = int_to_ptr.vmem [resolvable:$true] %s16_s20 }
  0x10   :  { %s499_s21 = scalar_lea.vmem %s17_s20, 128  ;;  %p504_p6 = scmp.lt.s32.totalorder %s17_s20, %s17_s20 }
  0x11   :  { %p500_p5 = scmp.ne.s32.totalorder %s17_s20, %s499_s21  ;;  %p505_p7 = scmp.lt.s32.totalorder %s499_s21, %s499_s21 }
  0x13   :  { %p506_p8 = por %p505_p7, %p504_p6 }
  0x15   :  { %p507_p9 = pnand %p506_p8, %p500_p5 }
  0x17   :  { %510 = shalt.err (!%p507_p9)
}
  0x18   :  { %s561_s22 = smov 64   ;;  %s562_s23 = smov 4  }
  0x19   :  { %22 = dma.hbm_to_vmem [thread:$0]  %s606_s0, 128, %s17_s20, [#allocation4], %s561_s22, %s561_s22, %s562_s23  }
  0x1a   :  { %s563_s26 = smov [#allocation8]  }
  0x1b   :  { %s40_s27 = sshll.u32 %s563_s26, 4  ;;  %s41_s27 = int_to_ptr.vmem [resolvable:$true] %s40_s27 }
  0x1c   :  { %s519_s1 = scalar_lea.vmem %s41_s27, 1024  ;;  %p524_p11 = scmp.lt.s32.totalorder %s41_s27, %s41_s27 }
  0x1d   :  { %p520_p10 = scmp.ne.s32.totalorder %s41_s27, %s519_s1  ;;  %p525_p12 = scmp.lt.s32.totalorder %s519_s1, %s519_s1 }
  0x1f   :  { %p526_p13 = por %p525_p12, %p524_p11 }
  0x21   :  { %p527_p0 = pnand %p526_p13, %p520_p10 }
  0x23   :  { %530 = shalt.err (!%p527_p0)
}
  0x24   :  { %46 = dma.hbm_to_vmem [thread:$0]  %s608_s2, 1024, %s41_s27, [#allocation7], %s561_s22, %s561_s22, %s562_s23  }
  0x25   :  { %551 = dma.done.wait [#allocation4], 128  }
  0x26   :  { %552 = vsyncadd [#allocation4], 4294967168 }
  0x27   :  { %553 = dma.done.wait [#allocation7], 3072  }
  0x28   :  { %554 = vsyncadd [#allocation7], 4294964224  ;;  %v564_v0 = vmov 0   ;;  %v430_v1 = vld [vmem:[#allocation6 + $0x74] ss:$8 sps:$4 sm:$0xff]   ;;  %v565_v19 = vmov 0.0  }
  0x29   :  { %199 = vmatprep.mubr.bf16.mxu0 %v564_v0  ;;  %v432_v2 = vld [vmem:[#allocation6 + $0x70] ss:$8 sps:$4 sm:$0xff]   ;;  %167 = vmatprep.subr.bf16.mxu0 %v430_v1  ;;  %v433_v3 = vld [vmem:[#allocation6 + $0x64] ss:$8 sps:$4 sm:$0xff]   ;;  %v435_v4 = vld [vmem:[#allocation6 + $0x60] ss:$8 sps:$4 sm:$0xff]  }
  0x2a   :  { %168 = vmatpush1.bf16.msra.mxu0 %v432_v2  ;;  %v436_v5 = vld [vmem:[#allocation6 + $0x54] ss:$8 sps:$4 sm:$0xff]   ;;  %v438_v6 = vld [vmem:[#allocation6 + $0x50] ss:$8 sps:$4 sm:$0xff]   ;;  %v439_v7 = vld [vmem:[#allocation6 + $0x44] ss:$8 sps:$4 sm:$0xff]   ;;  %399 = vmatprep.subr.bf16.mxu1 %v565_v19 }
  0x2b   :  { %169 = vmatprep.subr.bf16.mxu0 %v433_v3  ;;  %v441_v8 = vld [vmem:[#allocation6 + $0x40] ss:$8 sps:$4 sm:$0xff]   ;;  %v442_v9 = vld [vmem:[#allocation6 + $0x34] ss:$8 sps:$4 sm:$0xff]   ;;  %v444_v10 = vld [vmem:[#allocation6 + $0x30] ss:$8 sps:$4 sm:$0xff]  }
  0x2c   :  { %v445_v11 = vld [vmem:[#allocation6 + $0x24] ss:$8 sps:$4 sm:$0xff]   ;;  %v447_v12 = vld [vmem:[#allocation6 + $0x20] ss:$8 sps:$4 sm:$0xff]   ;;  %v448_v13 = vld [vmem:[#allocation6 + $0x14] ss:$8 sps:$4 sm:$0xff]  }
  0x2d   :  { %v450_v14 = vld [vmem:[#allocation6 + $0x10] ss:$8 sps:$4 sm:$0xff]   ;;  %v451_v15 = vld [vmem:[#allocation6 + $0x4] ss:$8 sps:$4 sm:$0xff]   ;;  %v453_v16 = vld [vmem:[#allocation6] ss:$8 sps:$4 sm:$0xff]  }
  0x2e   :  { %170 = vmatpush1.bf16.msra.mxu0 %v435_v4  ;;  %v454_v17 = vld [vmem:[#allocation3] sm:$0xff]   ;;  %v456_v20 = vld [vmem:[#allocation8 + $0x30] sm:$0xff]   ;;  %v457_v21 = vld [vmem:[#allocation8 + $0x28] sm:$0xff]   ;;  %vm566_vm0 = vmmov 0   ;;  %s567_s0 = smov [#allocation9]  }
  0x2f   :  { %171 = vmatprep.subr.bf16.mxu0 %v436_v5  ;;  %v455_v18 = vld [vmem:[#allocation8 + $0x38] sm:$0xff]   ;;  %v458_v22 = vld [vmem:[#allocation8 + $0x20] sm:$0xff]   ;;  %v460_v24 = vld [vmem:[#allocation8 + $0x10] sm:$0xff]   ;;  %415 = vmatprep.mubr.msk.bf16.mxu1 %vm566_vm0, %v565_v19  ;;  %s350_s2 = sshll.u32 %s567_s0, 4  ;;  %s351_s2 = int_to_ptr.vmem [resolvable:$true] %s350_s2 }
  0x30   :  { %400 = vmatpush3.bf16.msra.mxu1 %v455_v18  ;;  %v459_v23 = vld [vmem:[#allocation8 + $0x18] sm:$0xff]   ;;  %v461_v25 = vld [vmem:[#allocation8 + $0x8] sm:$0xff]   ;;  %v462_v26 = vld [vmem:[#allocation8] sm:$0xff]   ;;  %s531_s30 = scalar_lea.vmem %s351_s2, 256  ;;  %p536_p2 = scmp.lt.s32.totalorder %s351_s2, %s351_s2 }
  0x31   :  { %401 = vmatprep.subr.bf16.mxu1 %v565_v19  ;;  %p532_p1 = scmp.ne.s32.totalorder %s351_s2, %s531_s30  ;;  %p537_p3 = scmp.lt.s32.totalorder %s531_s30, %s531_s30 }
  0x32   :  { %172 = vmatpush1.bf16.msra.mxu0 %v438_v6 }
  0x33   :  { %173 = vmatprep.subr.bf16.mxu0 %v439_v7  ;;  %p538_p4 = por %p537_p3, %p536_p2 }
  0x34   :  { %402 = vmatpush3.bf16.msra.mxu1 %v456_v20 }
  0x35   :  { %403 = vmatprep.subr.bf16.mxu1 %v565_v19  ;;  %p539_p5 = pnand %p538_p4, %p532_p1 }
  0x36   :  { %174 = vmatpush1.bf16.msra.mxu0 %v441_v8 }
  0x37   :  { %175 = vmatprep.subr.bf16.mxu0 %v442_v9 }
  0x38   :  { %404 = vmatpush3.bf16.msra.mxu1 %v457_v21 }
  0x39   :  { %405 = vmatprep.subr.bf16.mxu1 %v565_v19 }
  0x3a   :  { %176 = vmatpush1.bf16.msra.mxu0 %v444_v10 }
  0x3b   :  { %177 = vmatprep.subr.bf16.mxu0 %v445_v11 }
  0x3c   :  { %406 = vmatpush3.bf16.msra.mxu1 %v458_v22 }
  0x3d   :  { %407 = vmatprep.subr.bf16.mxu1 %v565_v19 }
  0x3e   :  { %178 = vmatpush1.bf16.msra.mxu0 %v447_v12 }
  0x3f   :  { %179 = vmatprep.subr.bf16.mxu0 %v448_v13 }
  0x40   :  { %408 = vmatpush3.bf16.msra.mxu1 %v459_v23 }
  0x41   :  { %409 = vmatprep.subr.bf16.mxu1 %v565_v19 }
  0x42   :  { %180 = vmatpush1.bf16.msra.mxu0 %v450_v14 }
  0x43   :  { %181 = vmatprep.subr.bf16.mxu0 %v451_v15 }
  0x44   :  { %410 = vmatpush3.bf16.msra.mxu1 %v460_v24 }
  0x45   :  { %411 = vmatprep.subr.bf16.mxu1 %v565_v19 }
  0x46   :  { %182 = vmatpush1.bf16.msra.mxu0 %v453_v16 }
  0x48   :  { %412 = vmatpush3.bf16.msra.mxu1 %v461_v25 }
  0x49   :  { %200 = vmatmul.mubr.bf16.vlgmr.msra.gmra.mxu0 %v454_v17  ;;  %413 = vmatprep.subr.bf16.mxu1 %v565_v19 }
  0x4c   :  { %414 = vmatpush3.bf16.msra.mxu1 %v462_v26 }
 0x109   :  { %v201_v27 = vpop.f32.mrf.mxu0 }
 0x10a   :  { %v380_v28 = vmul.f32 -1.442695, %v201_v27 }
 0x10b   :  { %v203_v29 = vpop.f32.mrf.mxu0 }
 0x10c   :  { %463 = vpow2.f32 %v380_v28 }
 0x10d   :  { %v205_v30 = vpop.f32.mrf.mxu0 }
 0x10e   :  { %v381_v31 = vmul.f32 -1.442695, %v205_v30 }
 0x10f   :  { %v207_v40 = vpop.f32.mrf.mxu0 }
 0x110   :  { %465 = vpow2.f32 %v381_v31 }
 0x119   :  { %v464_v32 = vpop.eup %463 }
 0x11a   :  { %v216_v33 = vadd.f32 1.0, %v464_v32 }
 0x11c   :  { %467 = vrcp.f32 %v216_v33 }
 0x11d   :  { %v466_v34 = vpop.eup %465 }
 0x11e   :  { %v217_v35 = vadd.f32 1.0, %v466_v34 }
 0x120   :  { %469 = vrcp.f32 %v217_v35 }
 0x129   :  { %v468_v36 = vpop.eup %467 }
 0x12a   :  { %v222_v37 = vmul.f32 %v468_v36, %v201_v27 }
 0x12c   :  { %v224_v41 = vmul.f32 %v222_v37, %v203_v29 }
 0x12d   :  { %v470_v38 = vpop.eup %469 }
 0x12e   :  { %v223_v39 = vmul.f32 %v470_v38, %v205_v30 }
 0x130   :  { %v225_v42 = vmul.f32 %v223_v39, %v207_v40 }
 0x132   :  { %v228_v43 = vpack.c.bf16 %v225_v42, %v224_v41 }
 0x134   :  { %416 = vmatmul.mubr.bf16.vlgmr.msra.gmra.mxu1 %v228_v43 }
 0x1f4   :  { %v327_v44 = vpop.f32.mrf.mxu1 }
 0x1f5   :  { %343 = vst [vmem:[#allocation9] sm:$0xff] %v327_v44 }
 0x1f6   :  { %v417_v45 = vpop.f32.mrf.mxu1 }
 0x1f8   :  { %v330_v46 = vpop.f32.mrf.mxu1 }
 0x1f9   :  { %344 = vst [vmem:[#allocation9 + $0x8] sm:$0xff] %v330_v46 }
 0x1fa   :  { %v418_v47 = vpop.f32.mrf.mxu1 }
 0x1fb   :  { %542 = shalt.err (!%p539_p5)
}
 0x1fc   :  { %356 = dma.vmem_to_hbm [thread:$0]  %s351_s2, 256, %s609_s3, [#allocation5], %s558_s15, %s558_s15, %s559_s16  }
 0x1fd   :  { %555 = dma.done.wait [#allocation5], 256  }
 0x1fe   :  { %556 = vsyncadd [#allocation5], 4294967040 }
 0x1ff   :  { %360 = vsyncpa [#allocation4], 1 }
 0x200   :  { %361 = vsyncpa [#allocation7], 1 }
 0x201   :  { %362 = vsyncpa [#allocation5], 1 }

</bundles_post_ra>
